<compile_context>
chip_gen: v7x
topology: tpu7x:2x2x1
jax: 0.10.0
libtpu: 0.0.40
codegen_flags: <defaults>
</compile_context>

<pallas_src>
import functools

import jax
import jax.numpy as jnp
from jax import lax
from jax.experimental import pallas as pl
from jax.experimental.pallas import tpu as pltpu


def _cdiv(a, b):
    return -(-a // b)


def _round_up(a, m):
    return _cdiv(a, m) * m


def _embed_kernel(x_ref, w_ref, b_ref, o_ref, *, tb):
    # x_ref: (TB, L, tn)  -- native x layout: seq on sublanes, variates on lanes
    # w_ref: (L, D)       -- pre-transposed nn.Linear weight (canonical [K, N])
    # b_ref: (1, D)
    # o_ref: (TB, tn, D)  -- lane-dense on d_model
    w = w_ref[...]
    b = b_ref[...]
    for i in range(tb):  # static unroll over the folded batch chunk
        acc = lax.dot_general(
            x_ref[i],                                     # (L, tn)
            w,                                            # (L, D)
            dimension_numbers=(((0,), (0,)), ((), ())),   # contract L with L
            preferred_element_type=jnp.float32,
        )                                                 # (tn, D), f32 acc on MXU
        o_ref[i] = (acc + b).astype(o_ref.dtype)


def data_embedding_inverted(x, weight, bias, *, out_dtype=None, tn=None, tb=None,
                            vmem_limit_bytes=None):
    """x: [B, L, N]; weight: [d_model, c_in=L]; bias: [d_model] -> [B, N, d_model].

    Pass out_dtype=jnp.bfloat16 at inference to halve output HBM traffic
    (the kernel is HBM-bound on all current TPU generations).
    """
    B, L, N = x.shape
    D, c_in = weight.shape
    assert c_in == L, "c_in of the Linear must equal seq_len L"
    out_dtype = jnp.dtype(x.dtype if out_dtype is None else out_dtype)

    # One-time, tiny (L*D) re-layout of the PyTorch [D, L] weight to [L, D] so
    # the RHS of the in-kernel dot is already in canonical [K, N] MXU form.
    w_t = weight.T
    bias2 = bias.reshape(1, D)

    # --- per-generation VMEM budget -----------------------------------------
    if vmem_limit_bytes is None:
        cap = 64 << 20  # conservative fallback = v7x physical VMEM
        try:
            cap = int(getattr(pltpu.get_tpu_info(), "vmem_capacity_bytes", cap))
        except Exception:
            pass
        # ~96 MiB on v5e/v6e (128 MiB physical), ~48 MiB on v7x (64 MiB physical)
        vmem_limit_bytes = min(100 << 20, (cap * 3) // 4)

    # --- tile sizes -----------------------------------------------------------
    if tn is None:
        # Variate tile: multiple of 128 (lane axis of x / sublane axis of out),
        # no wider than needed.  x is NOT padded; edge blocks are masked.
        tn = min(_round_up(N, 128), 1024)
    assert tn % 128 == 0, "tn must be a multiple of 128"
    n_tiles = _cdiv(N, tn)

    x_item = x.dtype.itemsize
    o_item = out_dtype.itemsize
    w_bytes = L * D * w_t.dtype.itemsize + D * bias2.dtype.itemsize
    x_blk = L * tn * x_item            # per folded batch element
    o_blk = tn * D * o_item

    if tb is None:
        # Keep double-buffered x/out blocks (+ resident weight) inside the
        # scoped-VMEM budget with headroom, and target a few MB of x DMA per
        # step so the ~0.35us/step overhead is amortized.
        budget = (vmem_limit_bytes * 3) // 4 - 2 * w_bytes
        tb_vmem = max(1, budget // max(1, 2 * (x_blk + o_blk)))
        tb_dma = max(1, (4 << 20) // max(1, x_blk))
        tb = int(max(1, min(B, tb_vmem, tb_dma)))
    nb = _cdiv(B, tb)

    # v7x: 2 TensorCores share the "parallel" grid axes; ensure >= 2 grid steps
    # whenever the problem allows it.
    if nb * n_tiles < 2:
        if B >= 2:
            tb = _cdiv(B, 2)
            nb = _cdiv(B, tb)
        elif tn >= 256:
            tn = tn // 2               # still a multiple of 128
            n_tiles = _cdiv(N, tn)

    flops = 2 * B * N * L * D
    bytes_accessed = (B * L * N * x_item + L * D * w_t.dtype.itemsize
                      + D * bias2.dtype.itemsize + B * N * D * o_item)

    kernel = functools.partial(_embed_kernel, tb=tb)

    def build(single_buffer_resident):
        # Weight/bias index_maps are constant -> fetched once; single-buffer
        # them to reclaim VMEM when this jax version supports pipeline_mode.
        wb_kwargs = (dict(pipeline_mode=pl.Buffered(1))
                     if single_buffer_resident and hasattr(pl, "Buffered") else {})
        grid_spec = pl.GridSpec(
            grid=(nb, n_tiles),
            in_specs=[
                # x stays in its native [B, L, N] layout -> permute is fused.
                pl.BlockSpec((tb, L, tn), lambda i, j: (i, 0, j)),
                pl.BlockSpec((L, D), lambda i, j: (0, 0), **wb_kwargs),
                pl.BlockSpec((1, D), lambda i, j: (0, 0), **wb_kwargs),
            ],
            out_specs=pl.BlockSpec((tb, tn, D), lambda i, j: (i, j, 0)),
        )
        return pl.pallas_call(
            kernel,
            out_shape=jax.ShapeDtypeStruct((B, N, D), out_dtype),
            grid_spec=grid_spec,
            compiler_params=pltpu.CompilerParams(
                dimension_semantics=("parallel", "parallel"),
                vmem_limit_bytes=int(vmem_limit_bytes),
            ),
            cost_estimate=pl.CostEstimate(
                flops=flops, transcendentals=0, bytes_accessed=bytes_accessed),
        )

    try:
        out = build(True)(x, w_t, bias2)
    except Exception:
        # pipeline_mode=pl.Buffered(1) unsupported here -> default buffering.
        out = build(False)(x, w_t, bias2)

    # nn.Dropout(p=0.1) is identity at inference time, so no extra op.
    # TODO(synk): training-mode dropout (pltpu.prng_seed/prng_random_bits mask).
    # TODO(synk): if d_model is not a multiple of 128, pad weight/bias columns
    # (tiny) to get unmasked lane stores; D is 256/512 in practice, so skipped.
    return out


if __name__ == "__main__":
    # Shapes implied by the module: x [B, L, N], Linear(c_in=L, d_model=D).
    B, L, N, D = 2, 8, 4, 32

    key = jax.random.PRNGKey(0)
    kx, kw, kb = jax.random.split(key, 3)
    x = jax.random.normal(kx, (B, L, N), dtype=jnp.float32)
    # Deterministic synthetic parameters matching nn.Linear(L, D) shapes.
    weight = jax.random.normal(kw, (D, L), dtype=jnp.float32) * (1.0 / jnp.sqrt(L))
    bias = jax.random.normal(kb, (D,), dtype=jnp.float32) * 0.01

    out = jax.block_until_ready(data_embedding_inverted(x, weight, bias))

    # Reference check in plain JAX.
    ref = jnp.transpose(x, (0, 2, 1)) @ weight.T + bias
    assert out.shape == (B, N, D)
    assert out.dtype == x.dtype
    assert jnp.allclose(out, ref, atol=1e-5, rtol=1e-5), "mismatch vs reference"

    print("KERNEL_OK")
</pallas_src>

<mosaic_0001>
module attributes {stable_mosaic.version = 11 : i64} {
  func.func @_embed_kernel(%arg0: i32, %arg1: i32, %arg2: memref<1x8x128xf32, #tpu.memory_space<vmem>>, %arg3: memref<8x32xf32, #tpu.memory_space<vmem>>, %arg4: memref<1x32xf32, #tpu.memory_space<vmem>>, %arg5: memref<1x128x32xf32, #tpu.memory_space<vmem>>) attributes {dimension_semantics = [#tpu.dimension_semantics<parallel>, #tpu.dimension_semantics<parallel>], iteration_bounds = array<i64: 2, 1>, scalar_prefetch = 0 : i64, scratch_operands = 0 : i64, tpu.core_type = #tpu.core_type<tc>, window_params = [{transform_indices = @transform_0, window_bounds = array<i64: 1, 8, 128>}, {pipeline_mode = #tpu.pipeline_mode<synchronous>, transform_indices = @transform_1, window_bounds = array<i64: 8, 32>}, {pipeline_mode = #tpu.pipeline_mode<synchronous>, transform_indices = @transform_2, window_bounds = array<i64: 1, 32>}, {transform_indices = @transform_3, window_bounds = array<i64: 1, 128, 32>}]} {
    %c0 = arith.constant 0 : index
    %c0_0 = arith.constant 0 : index
    %0 = vector.load %arg3[%c0, %c0_0] : memref<8x32xf32, #tpu.memory_space<vmem>>, vector<8x32xf32>
    %c0_1 = arith.constant 0 : index
    %c0_2 = arith.constant 0 : index
    %1 = vector.load %arg4[%c0_1, %c0_2] : memref<1x32xf32, #tpu.memory_space<vmem>>, vector<1x32xf32>
    %c0_3 = arith.constant 0 : index
    %c0_4 = arith.constant 0 : index
    %c0_5 = arith.constant 0 : index
    %2 = vector.load %arg2[%c0_3, %c0_4, %c0_5] : memref<1x8x128xf32, #tpu.memory_space<vmem>>, vector<1x8x128xf32>
    %3 = vector.shape_cast %2 : vector<1x8x128xf32> to vector<8x128xf32>
    %cst = arith.constant dense<0.000000e+00> : vector<128x32xf32>
    %4 = tpu.matmul %3, %0, %cst {dimension_numbers = #tpu.dot_dimension_numbers<[0], [0], [1], [1], [0, 1, 1, 1], [], []>} : vector<8x128xf32>, vector<8x32xf32>, vector<128x32xf32> -> vector<128x32xf32>
    %5 = vector.broadcast %1 : vector<1x32xf32> to vector<128x32xf32>
    %6 = arith.addf %4, %5 : vector<128x32xf32>
    %c0_6 = arith.constant 0 : index
    %c0_7 = arith.constant 0 : index
    %c0_8 = arith.constant 0 : index
    %7 = vector.load %arg5[%c0_6, %c0_7, %c0_8] : memref<1x128x32xf32, #tpu.memory_space<vmem>>, vector<1x128x32xf32>
    %8 = vector.shape_cast %7 : vector<1x128x32xf32> to vector<128x32xf32>
    %9 = vector.shape_cast %6 : vector<128x32xf32> to vector<1x128x32xf32>
    tpu.vector_store %arg5[%c0_6, %c0_7, %c0_8], %9 {strides = array<i32>} : memref<1x128x32xf32, #tpu.memory_space<vmem>>, vector<1x128x32xf32>,
    return
  }
  func.func @transform_0(%arg0: i32, %arg1: i32) -> (i32, i32, i32) {
    %c0_i32 = arith.constant 0 : i32
    %c0_i32_0 = arith.constant 0 : i32
    return %arg0, %c0_i32, %arg1 : i32, i32, i32
  }
  func.func @transform_1(%arg0: i32, %arg1: i32) -> (i32, i32) {
    %c0_i32 = arith.constant 0 : i32
    %c0_i32_0 = arith.constant 0 : i32
    %c0_i32_1 = arith.constant 0 : i32
    return %c0_i32, %c0_i32_0 : i32, i32
  }
  func.func @transform_2(%arg0: i32, %arg1: i32) -> (i32, i32) {
    %c0_i32 = arith.constant 0 : i32
    %c0_i32_0 = arith.constant 0 : i32
    %c0_i32_1 = arith.constant 0 : i32
    return %c0_i32, %c0_i32_0 : i32, i32
  }
  func.func @transform_3(%arg0: i32, %arg1: i32) -> (i32, i32, i32) {
    %c0_i32 = arith.constant 0 : i32
    %c0_i32_0 = arith.constant 0 : i32
    return %arg0, %arg1, %c0_i32 : i32, i32, i32
  }
}

module attributes {stable_mosaic.version = 11 : i64} {
  func.func @_embed_kernel(%arg0: i32, %arg1: i32, %arg2: memref<1x8x128xf32, #tpu.memory_space<vmem>>, %arg3: memref<8x32xf32, #tpu.memory_space<vmem>>, %arg4: memref<1x32xf32, #tpu.memory_space<vmem>>, %arg5: memref<1x128x32xf32, #tpu.memory_space<vmem>>) attributes {dimension_semantics = [#tpu.dimension_semantics<parallel>, #tpu.dimension_semantics<parallel>], iteration_bounds = array<i64: 2, 1>, scalar_prefetch = 0 : i64, scratch_operands = 0 : i64, tpu.core_type = #tpu.core_type<tc>, window_params = [{transform_indices = @transform_0, window_bounds = array<i64: 1, 8, 128>}, {pipeline_mode = #tpu.pipeline_mode<synchronous>, transform_indices = @transform_1, window_bounds = array<i64: 8, 32>}, {pipeline_mode = #tpu.pipeline_mode<synchronous>, transform_indices = @transform_2, window_bounds = array<i64: 1, 32>}, {transform_indices = @transform_3, window_bounds = array<i64: 1, 128, 32>}]} {
    %c0 = arith.constant 0 : index
    %c0_0 = arith.constant 0 : index
    %0 = vector.load %arg3[%c0, %c0_0] : memref<8x32xf32, #tpu.memory_space<vmem>>, vector<8x32xf32>
    %c0_1 = arith.constant 0 : index
    %c0_2 = arith.constant 0 : index
    %1 = vector.load %arg4[%c0_1, %c0_2] : memref<1x32xf32, #tpu.memory_space<vmem>>, vector<1x32xf32>
    %c0_3 = arith.constant 0 : index
    %c0_4 = arith.constant 0 : index
    %c0_5 = arith.constant 0 : index
    %2 = vector.load %arg2[%c0_3, %c0_4, %c0_5] : memref<1x8x128xf32, #tpu.memory_space<vmem>>, vector<1x8x128xf32>
    %3 = vector.shape_cast %2 : vector<1x8x128xf32> to vector<8x128xf32>
    %cst = arith.constant dense<0.000000e+00> : vector<128x32xf32>
    %4 = tpu.matmul %3, %0, %cst {dimension_numbers = #tpu.dot_dimension_numbers<[0], [0], [1], [1], [0, 1, 1, 1], [], []>} : vector<8x128xf32>, vector<8x32xf32>, vector<128x32xf32> -> vector<128x32xf32>
    %5 = vector.broadcast %1 : vector<1x32xf32> to vector<128x32xf32>
    %6 = arith.addf %4, %5 : vector<128x32xf32>
    %c0_6 = arith.constant 0 : index
    %c0_7 = arith.constant 0 : index
    %c0_8 = arith.constant 0 : index
    %7 = vector.load %arg5[%c0_6, %c0_7, %c0_8] : memref<1x128x32xf32, #tpu.memory_space<vmem>>, vector<1x128x32xf32>
    %8 = vector.shape_cast %7 : vector<1x128x32xf32> to vector<128x32xf32>
    %9 = vector.shape_cast %6 : vector<128x32xf32> to vector<1x128x32xf32>
    tpu.vector_store %arg5[%c0_6, %c0_7, %c0_8], %9 {strides = array<i32>} : memref<1x128x32xf32, #tpu.memory_space<vmem>>, vector<1x128x32xf32>,
    return
  }
  func.func @transform_0(%arg0: i32, %arg1: i32) -> (i32, i32, i32) {
    %c0_i32 = arith.constant 0 : i32
    %c0_i32_0 = arith.constant 0 : i32
    return %arg0, %c0_i32, %arg1 : i32, i32, i32
  }
  func.func @transform_1(%arg0: i32, %arg1: i32) -> (i32, i32) {
    %c0_i32 = arith.constant 0 : i32
    %c0_i32_0 = arith.constant 0 : i32
    %c0_i32_1 = arith.constant 0 : i32
    return %c0_i32, %c0_i32_0 : i32, i32
  }
  func.func @transform_2(%arg0: i32, %arg1: i32) -> (i32, i32) {
    %c0_i32 = arith.constant 0 : i32
    %c0_i32_0 = arith.constant 0 : i32
    %c0_i32_1 = arith.constant 0 : i32
    return %c0_i32, %c0_i32_0 : i32, i32
  }
  func.func @transform_3(%arg0: i32, %arg1: i32) -> (i32, i32, i32) {
    %c0_i32 = arith.constant 0 : i32
    %c0_i32_0 = arith.constant 0 : i32
    return %arg0, %arg1, %c0_i32 : i32, i32, i32
  }
}

</mosaic_0001>

<bundles_post_ra>
// kernel: tpu_custom_call.1
= control target key start
LH: loop header
LB: loop body
LE: loop exit
PB: predicated region body
PF: predicated region fallthrough
CT: control target
= control target key end

     0   :  { %8 = vsyncpa [#allocation3], 0  ;;  %s936_s0 = inlined_call_operand.vmem [shape: f32[2,8,4], index: 0, kind: input, shape index: {}]   ;;  %s937_s1 = inlined_call_operand.vmem [shape: f32[8,32], index: 1, kind: input, shape index: {}]   ;;  %s938_s2 = inlined_call_operand.vmem [shape: f32[1,32], index: 2, kind: input, shape index: {}]   ;;  %s939_s3 = inlined_call_operand.hbm [shape: f32[2,4,32], index: 3, kind: output, shape index: {}]  }
   0x1   :  { %10 = vsyncpa [#allocation3 + $0x1], 0  ;;  %s769_s12 = smov 0   ;;  %s771_s13 = smov 0  }
   0x2   :  { %s773_s14 = smov 0   ;;  %s775_s15 = smov 0  }
   0x3   :  { %s777_s16 = smov 0   ;;  %s779_s17 = smov 0  }
   0x4 LB: > { %s540_s18 = sadd.s32 4294967295, %s744_s17   ;;  %s541_s19 = sadd.s32 4294967294, %s744_s17   ;;  %s744_s17 = sphi %s779_s17, %s16_s17   ;;  %s740_s16 = sphi %s777_s16, %s946_s16   ;;  %s736_s15 = sphi %s775_s15, %s945_s15   ;;  %s732_s14 = sphi %s773_s14, %s944_s14   ;;  %s728_s13 = sphi %s771_s13, %s943_s13   ;;  %s724_s12 = sphi %s769_s12, %s942_s12  }
   0x5   : > { %s28_s20 = sadd.s32 1, %s740_s16  ;;  %s107_s21 = sadd.s32 1, %s732_s14 }
   0x6   : > { %p30_p0 = scmp.ge.s32.totalorder %s28_s20, 2  ;;  %p117_p1 = scmp.ne.s32.totalorder %s732_s14, %s728_s13 }
   0x7   : > { %p118_p2 = scmp.eq.s32.totalorder %s540_s18, 1  ;;  %p123_p3 = scmp.ne.s32.totalorder %s728_s13, %s724_s12 }
   0x8   : > { %s948_s20 = smov (%p30_p0, %s28_s20), 0  ;;  %p124_p5 = scmp.eq.s32.totalorder %s541_s19, 1 }
   0x9   : > { %p809_p4 = por %p118_p2, %p117_p1  ;;  %s102_s23 = ssub.s32 %s740_s16, %s948_s20 }
   0xa   : > { %p544_p6 = scmp.ge.s32.totalorder %s744_s17, 1  ;;  %p105_p7 = scmp.eq.s32.totalorder %s102_s23, 0 }
   0xb   : > { %p816_p8 = por %p124_p5, %p123_p3  ;;  %p158_p9 = scmp.lt.s32.totalorder %s744_s17, 3 }
   0xc   : > { %s822_s25 = scalar_select %p105_p7, %s732_s14, %s107_s21  }
   0xd   : > { %p159_p10 = pnand %p544_p6, %p158_p9 }
   0xe   : > { %p184_p11 = scmp.lt.s32.totalorder (!%p159_p10), %s736_s15, 1  ;;  %v194_v1 = vld [vmem:[%s937_s1] sm:$0xff] (!%p159_p10)  ;;  %vm235_vm0 = vcmask (!%p159_p10), 64512   ;;  %s181_s6 = sand.u32 (!%p159_p10), 1, %s728_s13   ;;  %vm429_vm1 = vcmask (!%p159_p10), 261120  }
   0xf   : > { %162 = sbr.rel (%p159_p10) target bundleno = 457 (0x1c9), region = 32  ;;  %585 = vmatprep.subr.mxu0 (!%p159_p10), %v194_v1  ;;  %611 = vmatprep.subr.mxu1 (!%p159_p10), %v194_v1  ;;  %s545_s7 = sshll.u32 (!%p159_p10), %s181_s6, 7  ;;  %v547_v18 = vld [vmem:[%s938_s2] ss:$0 sm:$0xff] (!%p159_p10) }
  0x10   : > { %586 = vmatpush3.msra.mxu0 (!%p159_p10), %v194_v1  ;;  %612 = vmatpush3.msra.mxu1 (!%p159_p10), %v194_v1  ;;  %s854_s10 = scalar_lea.vmem (!%p159_p10), [#allocation2], %s545_s7  ;;  %s890_s11 = scalar_lea.sflag (!%p159_p10), [#allocation3], %s181_s6 }
  0x16   : > { %s185_s26 = scalar_select %p184_p11, %s736_s15, 1 }
  0x18   : > { %s546_s27 = sshll.u32 %s185_s26, 3 }
  0x19   : > { %s190_s30 = scalar_lea.vmem %s936_s0, %s546_s27 }
  0x1a   : > { %v196_v0 = vld [vmem:[%s190_s30] sm:$0xff] }
  0x1b   : > { %203 = vxpose.xlu0.b32.start.end [1/1] (short) %v196_v0, 128 }
  0x9b   : > { %v219_v2 = vpop.trf.xlu0 }
  0x9c   : > { %587 = vmatprep.mubr.msk.f32.mxu0 %vm235_vm0, %v219_v2 }
  0x9f   : > { %v220_v3 = vpop.trf.xlu0 }
  0xa0   : > { %588 = vmatmul.mubr.msk.f32.vlgmr.msra.gmra.mrb[0].mxu0 %vm235_vm0, %v220_v3 }
  0xa3   : > { %v221_v4 = vpop.trf.xlu0 }
  0xa4   : > { %590 = vmatprep.mubr.msk.f32.mxu0 %vm235_vm0, %v221_v4 }
  0xa7   : > { %v222_v5 = vpop.trf.xlu0 }
  0xa8   : > { %591 = vmatmul.mubr.msk.f32.gmra.mrb[2].mxu0 %vm235_vm0, %v222_v5 }
  0xab   : > { %v223_v6 = vpop.trf.xlu0 }
  0xac   : > { %593 = vmatprep.mubr.msk.f32.mxu0 %vm235_vm0, %v223_v6 }
  0xaf   : > { %v224_v7 = vpop.trf.xlu0 }
  0xb0   : > { %594 = vmatmul.mubr.msk.f32.gmra.mrb[4].mxu0 %vm235_vm0, %v224_v7 }
  0xb3   : > { %v225_v8 = vpop.trf.xlu0 }
  0xb4   : > { %596 = vmatprep.mubr.msk.f32.mxu0 %vm235_vm0, %v225_v8 }
  0xb7   : > { %v226_v9 = vpop.trf.xlu0 }
  0xb8   : > { %597 = vmatmul.mubr.msk.f32.gmra.mrb[6].mxu0 %vm235_vm0, %v226_v9 }
  0xbb   : > { %v227_v10 = vpop.trf.xlu0 }
  0xbc   : > { %599 = vmatprep.mubr.msk.f32.mxu1 %vm235_vm0, %v227_v10 }
  0xbf   : > { %v228_v11 = vpop.trf.xlu0 }
  0xc0   : > { %600 = vmatmul.mubr.msk.f32.vlgmr.msra.gmra.mrb[0].mxu1 %vm235_vm0, %v228_v11 }
  0xc3   : > { %v229_v12 = vpop.trf.xlu0 }
  0xc4   : > { %602 = vmatprep.mubr.msk.f32.mxu1 %vm235_vm0, %v229_v12 }
  0xc7   : > { %v230_v13 = vpop.trf.xlu0 }
  0xc8   : > { %603 = vmatmul.mubr.msk.f32.gmra.mrb[2].mxu1 %vm235_vm0, %v230_v13 }
  0xcb   : > { %v231_v14 = vpop.trf.xlu0 }
  0xcc   : > { %605 = vmatprep.mubr.msk.f32.mxu1 %vm235_vm0, %v231_v14 }
  0xcf   : > { %v232_v15 = vpop.trf.xlu0 }
  0xd0   : > { %606 = vmatmul.mubr.msk.f32.gmra.mrb[4].mxu1 %vm235_vm0, %v232_v15 }
  0xd3   : > { %v233_v16 = vpop.trf.xlu0 }
  0xd4   : > { %608 = vmatprep.mubr.msk.f32.mxu1 %vm235_vm0, %v233_v16 }
  0xd7   : > { %v234_v17 = vpop.trf.xlu0 }
  0xd8   : > { %609 = vmatmul.mubr.msk.f32.gmra.mrb[6].mxu1 %vm235_vm0, %v234_v17 }
 0x173   : > { %v589_v19 = vpop.f32.mrb[0].mxu0 }
 0x174   : > { %v356_v20 = vadd.f32 %v589_v19, %v547_v18  ;;  %v350_v21 = vpop.f32.mrb[1].mxu0 }
 0x175   : > { %v351_v22 = vadd.f32 %v547_v18, %v350_v21 }
 0x176   : > { %431 = vst.msk [vmem:[%s854_s10 + $0x8] sm:$0xff] %vm429_vm1, %v356_v20 }
 0x177   : > { %430 = vst.msk [vmem:[%s854_s10] sm:$0xff] %vm429_vm1, %v351_v22 }
 0x17b   : > { %v592_v23 = vpop.f32.mrb[2].mxu0 }
 0x17c   : > { %v366_v24 = vadd.f32 %v592_v23, %v547_v18  ;;  %v360_v25 = vpop.f32.mrb[3].mxu0 }
 0x17d   : > { %v361_v26 = vadd.f32 %v547_v18, %v360_v25 }
 0x17e   : > { %433 = vst.msk [vmem:[%s854_s10 + $0x18] sm:$0xff] %vm429_vm1, %v366_v24 }
 0x17f   : > { %432 = vst.msk [vmem:[%s854_s10 + $0x10] sm:$0xff] %vm429_vm1, %v361_v26 }
 0x183   : > { %v595_v27 = vpop.f32.mrb[4].mxu0 }
 0x184   : > { %v376_v28 = vadd.f32 %v595_v27, %v547_v18  ;;  %v370_v29 = vpop.f32.mrb[5].mxu0 }
 0x185   : > { %v371_v30 = vadd.f32 %v547_v18, %v370_v29 }
 0x186   : > { %435 = vst.msk [vmem:[%s854_s10 + $0x28] sm:$0xff] %vm429_vm1, %v376_v28 }
 0x187   : > { %434 = vst.msk [vmem:[%s854_s10 + $0x20] sm:$0xff] %vm429_vm1, %v371_v30 }
 0x18b   : > { %v598_v31 = vpop.f32.mrb[6].mxu0 }
 0x18c   : > { %v386_v32 = vadd.f32 %v598_v31, %v547_v18  ;;  %v380_v33 = vpop.f32.mrb[7].mxu0 }
 0x18d   : > { %v381_v34 = vadd.f32 %v547_v18, %v380_v33 }
 0x18e   : > { %437 = vst.msk [vmem:[%s854_s10 + $0x38] sm:$0xff] %vm429_vm1, %v386_v32 }
 0x18f   : > { %436 = vst.msk [vmem:[%s854_s10 + $0x30] sm:$0xff] %vm429_vm1, %v381_v34 }
 0x193   : > { %v601_v35 = vpop.f32.mrb[0].mxu1 }
 0x194   : > { %v396_v36 = vadd.f32 %v601_v35, %v547_v18  ;;  %v390_v37 = vpop.f32.mrb[1].mxu1 }
 0x195   : > { %v391_v38 = vadd.f32 %v547_v18, %v390_v37 }
 0x196   : > { %439 = vst.msk [vmem:[%s854_s10 + $0x48] sm:$0xff] %vm429_vm1, %v396_v36 }
 0x197   : > { %438 = vst.msk [vmem:[%s854_s10 + $0x40] sm:$0xff] %vm429_vm1, %v391_v38 }
 0x19b   : > { %v604_v39 = vpop.f32.mrb[2].mxu1 }
 0x19c   : > { %v406_v40 = vadd.f32 %v604_v39, %v547_v18  ;;  %v400_v41 = vpop.f32.mrb[3].mxu1 }
 0x19d   : > { %v401_v42 = vadd.f32 %v547_v18, %v400_v41 }
 0x19e   : > { %441 = vst.msk [vmem:[%s854_s10 + $0x58] sm:$0xff] %vm429_vm1, %v406_v40 }
 0x19f   : > { %440 = vst.msk [vmem:[%s854_s10 + $0x50] sm:$0xff] %vm429_vm1, %v401_v42 }
 0x1a3   : > { %v607_v43 = vpop.f32.mrb[4].mxu1 }
 0x1a4   : > { %v416_v44 = vadd.f32 %v607_v43, %v547_v18  ;;  %v410_v45 = vpop.f32.mrb[5].mxu1 }
 0x1a5   : > { %v411_v46 = vadd.f32 %v547_v18, %v410_v45 }
 0x1a6   : > { %443 = vst.msk [vmem:[%s854_s10 + $0x68] sm:$0xff] %vm429_vm1, %v416_v44 }
 0x1a7   : > { %442 = vst.msk [vmem:[%s854_s10 + $0x60] sm:$0xff] %vm429_vm1, %v411_v46 }
 0x1a9   : > { %453 = sbr.rel (!%p809_p4) target bundleno = 457 (0x1c9), region = 36 }
 0x1ab   : > { %v610_v47 = vpop.f32.mrb[6].mxu1 }
 0x1ac   : > { %v426_v48 = vadd.f32 %v610_v47, %v547_v18  ;;  %v420_v49 = vpop.f32.mrb[7].mxu1 }
 0x1ad   : > { %v421_v50 = vadd.f32 %v547_v18, %v420_v49 }
 0x1ae   : > { %445 = vst.msk [vmem:[%s854_s10 + $0x78] sm:$0xff] %vm429_vm1, %v426_v48 }
 0x1af   : > { %444 = vst.msk [vmem:[%s854_s10 + $0x70] sm:$0xff] %vm429_vm1, %v421_v50 }
 0x1b0   : > { %459 = vsyncadd %s890_s11, 1984  ;;  %s565_s18 = sshll.u32 %s736_s15, 6  ;;  %s465_s19 = sshll.u32 %s854_s10, 4  ;;  %s466_s19 = int_to_ptr.vmem [resolvable:$true] %s465_s19 }
 0x1b1   : > { %s900_s26 = scalar_lea.hbm %s939_s3, %s565_s18  ;;  %s670_s27 = scalar_lea.vmem %s466_s19, 64 }
 0x1b2   : > { %p671_p12 = scmp.ne.s32.totalorder %s466_s19, %s670_s27  ;;  %s746_s28 = smov [#allocation2]  }
 0x1b3   : > { %s672_s29 = sshll.u32 %s746_s28, 4  ;;  %s673_s29 = int_to_ptr.vmem [resolvable:$false] %s672_s29 }
 0x1b4   : > { %s674_s30 = scalar_lea.vmem %s673_s29, 4096  ;;  %p675_p13 = scmp.lt.s32.totalorder %s466_s19, %s673_s29 }
 0x1b5   : > { %p676_p0 = scmp.lt.s32.totalorder %s674_s30, %s670_s27 }
 0x1b7   : > { %p677_p1 = por %p676_p0, %p675_p13 }
 0x1b9   : > { %p678_p2 = pnand %p677_p1, %p671_p12 }
 0x1bb   : > { %681 = shalt.err (!%p678_p2)
}
 0x1bc   : > { %s682_s15 = scalar_lea.hbm %s900_s26, 64  ;;  %s684_s5 = scalar_lea.hbm %s939_s3, 128 }
 0x1bd   : > { %p683_p3 = scmp.ne.s32.totalorder %s900_s26, %s682_s15  ;;  %p685_p4 = scmp.lt.u32.totalorder %s900_s26, %s939_s3 }
 0x1be   : > { %p686_p5 = scmp.lt.u32.totalorder %s684_s5, %s682_s15  ;;  %p688_p7 = scmp.lt.u32.totalorder %s682_s15, %s900_s26 }
 0x1c0   : > { %p687_p6 = por %p686_p5, %p685_p4 }
 0x1c2   : > { %p689_p9 = por %p688_p7, %p687_p6 }
 0x1c4   : > { %p690_p10 = pnand %p689_p9, %p683_p3 }
 0x1c6   : > { %693 = shalt.err (!%p690_p10)
}
 0x1c7   : > { %s747_s8 = smov 64   ;;  %s748_s9 = smov 4  }
 0x1c8   : > { %471 = dma.vmem_to_hbm [thread:$0]  %s466_s19, 64, %s900_s26, %s890_s11, %s747_s8, %s747_s8, %s748_s9  }
 0x1c9 PF: > { %p618_p11 = scmp.ge.s32.totalorder %s744_s17, 2  ;;  %s480_s10 = sand.u32 1, %s724_s12  }
 0x1ca   : > { %s481_s18 = scalar_lea.sflag [#allocation3], %s480_s10 }
 0x1cb   : > { %p615_p12 = pnand %p618_p11, %p816_p8 }
 0x1cd   : > { %719 = dma.done.wait (!%p615_p12), %s481_s18, 2048  }
 0x1ce   : > { %721 = vsyncadd (!%p615_p12), %s481_s18, 4294965248  ;;  %s16_s17 = sadd.s32 1, %s744_s17   ;;  %s942_s12 = smov %s728_s13 }
 0x1cf   : > { %p13_p13 = scmp.ge.s32.totalorder %s16_s17, 4   ;;  %s943_s13 = smov %s732_s14 }
 0x1d0   : > { %s944_s14 = smov %s822_s25  ;;  %s945_s15 = smov %s740_s16 }
 0x1d1   : > { %s946_s16 = smov %s948_s20  ;;  %15 = sbr.rel (!%p13_p13) target bundleno = 4 (0x4), region = 67 }
 0x1d8   :  { %486 = vsyncpa [#allocation3], 1 }
 0x1d9   :  { %488 = vsyncpa [#allocation3 + $0x1], 1 }

// kernel: tpu_custom_call.1
= control target key start
LH: loop header
LB: loop body
LE: loop exit
PB: predicated region body
PF: predicated region fallthrough
CT: control target
= control target key end

     0   :  { %8 = vsyncpa [#allocation3], 0  ;;  %s936_s0 = inlined_call_operand.vmem [shape: f32[2,8,4], index: 0, kind: input, shape index: {}]   ;;  %s937_s1 = inlined_call_operand.vmem [shape: f32[8,32], index: 1, kind: input, shape index: {}]   ;;  %s938_s2 = inlined_call_operand.vmem [shape: f32[1,32], index: 2, kind: input, shape index: {}]   ;;  %s939_s3 = inlined_call_operand.hbm [shape: f32[2,4,32], index: 3, kind: output, shape index: {}]  }
   0x1   :  { %10 = vsyncpa [#allocation3 + $0x1], 0  ;;  %s769_s12 = smov 0   ;;  %s771_s13 = smov 0  }
   0x2   :  { %s773_s14 = smov 0   ;;  %s775_s15 = smov 0  }
   0x3   :  { %s777_s16 = smov 0   ;;  %s779_s17 = smov 0  }
   0x4 LB: > { %s540_s18 = sadd.s32 4294967295, %s744_s17   ;;  %s541_s19 = sadd.s32 4294967294, %s744_s17   ;;  %s744_s17 = sphi %s779_s17, %s16_s17   ;;  %s740_s16 = sphi %s777_s16, %s946_s16   ;;  %s736_s15 = sphi %s775_s15, %s945_s15   ;;  %s732_s14 = sphi %s773_s14, %s944_s14   ;;  %s728_s13 = sphi %s771_s13, %s943_s13   ;;  %s724_s12 = sphi %s769_s12, %s942_s12  }
   0x5   : > { %s28_s20 = sadd.s32 1, %s740_s16  ;;  %s107_s21 = sadd.s32 1, %s732_s14 }
   0x6   : > { %p30_p0 = scmp.ge.s32.totalorder %s28_s20, 2  ;;  %p117_p1 = scmp.ne.s32.totalorder %s732_s14, %s728_s13 }
   0x7   : > { %p118_p2 = scmp.eq.s32.totalorder %s540_s18, 1  ;;  %p123_p3 = scmp.ne.s32.totalorder %s728_s13, %s724_s12 }
   0x8   : > { %s948_s20 = smov (%p30_p0, %s28_s20), 0  ;;  %p124_p5 = scmp.eq.s32.totalorder %s541_s19, 1 }
   0x9   : > { %p809_p4 = por %p118_p2, %p117_p1  ;;  %s102_s23 = ssub.s32 %s740_s16, %s948_s20 }
   0xa   : > { %p544_p6 = scmp.ge.s32.totalorder %s744_s17, 1  ;;  %p105_p7 = scmp.eq.s32.totalorder %s102_s23, 0 }
   0xb   : > { %p816_p8 = por %p124_p5, %p123_p3  ;;  %p158_p9 = scmp.lt.s32.totalorder %s744_s17, 3 }
   0xc   : > { %s822_s25 = scalar_select %p105_p7, %s732_s14, %s107_s21  }
   0xd   : > { %p159_p10 = pnand %p544_p6, %p158_p9 }
   0xe   : > { %p184_p11 = scmp.lt.s32.totalorder (!%p159_p10), %s736_s15, 1  ;;  %v194_v1 = vld [vmem:[%s937_s1] sm:$0xff] (!%p159_p10)  ;;  %vm235_vm0 = vcmask (!%p159_p10), 64512   ;;  %s181_s6 = sand.u32 (!%p159_p10), 1, %s728_s13   ;;  %vm429_vm1 = vcmask (!%p159_p10), 261120  }
   0xf   : > { %162 = sbr.rel (%p159_p10) target bundleno = 457 (0x1c9), region = 32  ;;  %585 = vmatprep.subr.mxu0 (!%p159_p10), %v194_v1  ;;  %611 = vmatprep.subr.mxu1 (!%p159_p10), %v194_v1  ;;  %s545_s7 = sshll.u32 (!%p159_p10), %s181_s6, 7  ;;  %v547_v18 = vld [vmem:[%s938_s2] ss:$0 sm:$0xff] (!%p159_p10) }
  0x10   : > { %586 = vmatpush3.msra.mxu0 (!%p159_p10), %v194_v1  ;;  %612 = vmatpush3.msra.mxu1 (!%p159_p10), %v194_v1  ;;  %s854_s10 = scalar_lea.vmem (!%p159_p10), [#allocation2], %s545_s7  ;;  %s890_s11 = scalar_lea.sflag (!%p159_p10), [#allocation3], %s181_s6 }
  0x16   : > { %s185_s26 = scalar_select %p184_p11, %s736_s15, 1 }
  0x18   : > { %s546_s27 = sshll.u32 %s185_s26, 3 }
  0x19   : > { %s190_s30 = scalar_lea.vmem %s936_s0, %s546_s27 }
  0x1a   : > { %v196_v0 = vld [vmem:[%s190_s30] sm:$0xff] }
  0x1b   : > { %203 = vxpose.xlu0.b32.start.end [1/1] (short) %v196_v0, 128 }
  0x9b   : > { %v219_v2 = vpop.trf.xlu0 }
  0x9c   : > { %587 = vmatprep.mubr.msk.f32.mxu0 %vm235_vm0, %v219_v2 }
  0x9f   : > { %v220_v3 = vpop.trf.xlu0 }
  0xa0   : > { %588 = vmatmul.mubr.msk.f32.vlgmr.msra.gmra.mrb[0].mxu0 %vm235_vm0, %v220_v3 }
  0xa3   : > { %v221_v4 = vpop.trf.xlu0 }
  0xa4   : > { %590 = vmatprep.mubr.msk.f32.mxu0 %vm235_vm0, %v221_v4 }
  0xa7   : > { %v222_v5 = vpop.trf.xlu0 }
  0xa8   : > { %591 = vmatmul.mubr.msk.f32.gmra.mrb[2].mxu0 %vm235_vm0, %v222_v5 }
  0xab   : > { %v223_v6 = vpop.trf.xlu0 }
  0xac   : > { %593 = vmatprep.mubr.msk.f32.mxu0 %vm235_vm0, %v223_v6 }
  0xaf   : > { %v224_v7 = vpop.trf.xlu0 }
  0xb0   : > { %594 = vmatmul.mubr.msk.f32.gmra.mrb[4].mxu0 %vm235_vm0, %v224_v7 }
  0xb3   : > { %v225_v8 = vpop.trf.xlu0 }
  0xb4   : > { %596 = vmatprep.mubr.msk.f32.mxu0 %vm235_vm0, %v225_v8 }
  0xb7   : > { %v226_v9 = vpop.trf.xlu0 }
  0xb8   : > { %597 = vmatmul.mubr.msk.f32.gmra.mrb[6].mxu0 %vm235_vm0, %v226_v9 }
  0xbb   : > { %v227_v10 = vpop.trf.xlu0 }
  0xbc   : > { %599 = vmatprep.mubr.msk.f32.mxu1 %vm235_vm0, %v227_v10 }
  0xbf   : > { %v228_v11 = vpop.trf.xlu0 }
  0xc0   : > { %600 = vmatmul.mubr.msk.f32.vlgmr.msra.gmra.mrb[0].mxu1 %vm235_vm0, %v228_v11 }
  0xc3   : > { %v229_v12 = vpop.trf.xlu0 }
  0xc4   : > { %602 = vmatprep.mubr.msk.f32.mxu1 %vm235_vm0, %v229_v12 }
  0xc7   : > { %v230_v13 = vpop.trf.xlu0 }
  0xc8   : > { %603 = vmatmul.mubr.msk.f32.gmra.mrb[2].mxu1 %vm235_vm0, %v230_v13 }
  0xcb   : > { %v231_v14 = vpop.trf.xlu0 }
  0xcc   : > { %605 = vmatprep.mubr.msk.f32.mxu1 %vm235_vm0, %v231_v14 }
  0xcf   : > { %v232_v15 = vpop.trf.xlu0 }
  0xd0   : > { %606 = vmatmul.mubr.msk.f32.gmra.mrb[4].mxu1 %vm235_vm0, %v232_v15 }
  0xd3   : > { %v233_v16 = vpop.trf.xlu0 }
  0xd4   : > { %608 = vmatprep.mubr.msk.f32.mxu1 %vm235_vm0, %v233_v16 }
  0xd7   : > { %v234_v17 = vpop.trf.xlu0 }
  0xd8   : > { %609 = vmatmul.mubr.msk.f32.gmra.mrb[6].mxu1 %vm235_vm0, %v234_v17 }
 0x173   : > { %v589_v19 = vpop.f32.mrb[0].mxu0 }
 0x174   : > { %v356_v20 = vadd.f32 %v589_v19, %v547_v18  ;;  %v350_v21 = vpop.f32.mrb[1].mxu0 }
 0x175   : > { %v351_v22 = vadd.f32 %v547_v18, %v350_v21 }
 0x176   : > { %431 = vst.msk [vmem:[%s854_s10 + $0x8] sm:$0xff] %vm429_vm1, %v356_v20 }
 0x177   : > { %430 = vst.msk [vmem:[%s854_s10] sm:$0xff] %vm429_vm1, %v351_v22 }
 0x17b   : > { %v592_v23 = vpop.f32.mrb[2].mxu0 }
 0x17c   : > { %v366_v24 = vadd.f32 %v592_v23, %v547_v18  ;;  %v360_v25 = vpop.f32.mrb[3].mxu0 }
 0x17d   : > { %v361_v26 = vadd.f32 %v547_v18, %v360_v25 }
 0x17e   : > { %433 = vst.msk [vmem:[%s854_s10 + $0x18] sm:$0xff] %vm429_vm1, %v366_v24 }
 0x17f   : > { %432 = vst.msk [vmem:[%s854_s10 + $0x10] sm:$0xff] %vm429_vm1, %v361_v26 }
 0x183   : > { %v595_v27 = vpop.f32.mrb[4].mxu0 }
 0x184   : > { %v376_v28 = vadd.f32 %v595_v27, %v547_v18  ;;  %v370_v29 = vpop.f32.mrb[5].mxu0 }
 0x185   : > { %v371_v30 = vadd.f32 %v547_v18, %v370_v29 }
 0x186   : > { %435 = vst.msk [vmem:[%s854_s10 + $0x28] sm:$0xff] %vm429_vm1, %v376_v28 }
 0x187   : > { %434 = vst.msk [vmem:[%s854_s10 + $0x20] sm:$0xff] %vm429_vm1, %v371_v30 }
 0x18b   : > { %v598_v31 = vpop.f32.mrb[6].mxu0 }
 0x18c   : > { %v386_v32 = vadd.f32 %v598_v31, %v547_v18  ;;  %v380_v33 = vpop.f32.mrb[7].mxu0 }
 0x18d   : > { %v381_v34 = vadd.f32 %v547_v18, %v380_v33 }
 0x18e   : > { %437 = vst.msk [vmem:[%s854_s10 + $0x38] sm:$0xff] %vm429_vm1, %v386_v32 }
 0x18f   : > { %436 = vst.msk [vmem:[%s854_s10 + $0x30] sm:$0xff] %vm429_vm1, %v381_v34 }
 0x193   : > { %v601_v35 = vpop.f32.mrb[0].mxu1 }
 0x194   : > { %v396_v36 = vadd.f32 %v601_v35, %v547_v18  ;;  %v390_v37 = vpop.f32.mrb[1].mxu1 }
 0x195   : > { %v391_v38 = vadd.f32 %v547_v18, %v390_v37 }
 0x196   : > { %439 = vst.msk [vmem:[%s854_s10 + $0x48] sm:$0xff] %vm429_vm1, %v396_v36 }
 0x197   : > { %438 = vst.msk [vmem:[%s854_s10 + $0x40] sm:$0xff] %vm429_vm1, %v391_v38 }
 0x19b   : > { %v604_v39 = vpop.f32.mrb[2].mxu1 }
 0x19c   : > { %v406_v40 = vadd.f32 %v604_v39, %v547_v18  ;;  %v400_v41 = vpop.f32.mrb[3].mxu1 }
 0x19d   : > { %v401_v42 = vadd.f32 %v547_v18, %v400_v41 }
 0x19e   : > { %441 = vst.msk [vmem:[%s854_s10 + $0x58] sm:$0xff] %vm429_vm1, %v406_v40 }
 0x19f   : > { %440 = vst.msk [vmem:[%s854_s10 + $0x50] sm:$0xff] %vm429_vm1, %v401_v42 }
 0x1a3   : > { %v607_v43 = vpop.f32.mrb[4].mxu1 }
 0x1a4   : > { %v416_v44 = vadd.f32 %v607_v43, %v547_v18  ;;  %v410_v45 = vpop.f32.mrb[5].mxu1 }
 0x1a5   : > { %v411_v46 = vadd.f32 %v547_v18, %v410_v45 }
 0x1a6   : > { %443 = vst.msk [vmem:[%s854_s10 + $0x68] sm:$0xff] %vm429_vm1, %v416_v44 }
 0x1a7   : > { %442 = vst.msk [vmem:[%s854_s10 + $0x60] sm:$0xff] %vm429_vm1, %v411_v46 }
 0x1a9   : > { %453 = sbr.rel (!%p809_p4) target bundleno = 457 (0x1c9), region = 36 }
 0x1ab   : > { %v610_v47 = vpop.f32.mrb[6].mxu1 }
 0x1ac   : > { %v426_v48 = vadd.f32 %v610_v47, %v547_v18  ;;  %v420_v49 = vpop.f32.mrb[7].mxu1 }
 0x1ad   : > { %v421_v50 = vadd.f32 %v547_v18, %v420_v49 }
 0x1ae   : > { %445 = vst.msk [vmem:[%s854_s10 + $0x78] sm:$0xff] %vm429_vm1, %v426_v48 }
 0x1af   : > { %444 = vst.msk [vmem:[%s854_s10 + $0x70] sm:$0xff] %vm429_vm1, %v421_v50 }
 0x1b0   : > { %459 = vsyncadd %s890_s11, 1984  ;;  %s565_s18 = sshll.u32 %s736_s15, 6  ;;  %s465_s19 = sshll.u32 %s854_s10, 4  ;;  %s466_s19 = int_to_ptr.vmem [resolvable:$true] %s465_s19 }
 0x1b1   : > { %s900_s26 = scalar_lea.hbm %s939_s3, %s565_s18  ;;  %s670_s27 = scalar_lea.vmem %s466_s19, 64 }
 0x1b2   : > { %p671_p12 = scmp.ne.s32.totalorder %s466_s19, %s670_s27  ;;  %s746_s28 = smov [#allocation2]  }
 0x1b3   : > { %s672_s29 = sshll.u32 %s746_s28, 4  ;;  %s673_s29 = int_to_ptr.vmem [resolvable:$false] %s672_s29 }
 0x1b4   : > { %s674_s30 = scalar_lea.vmem %s673_s29, 4096  ;;  %p675_p13 = scmp.lt.s32.totalorder %s466_s19, %s673_s29 }
 0x1b5   : > { %p676_p0 = scmp.lt.s32.totalorder %s674_s30, %s670_s27 }
 0x1b7   : > { %p677_p1 = por %p676_p0, %p675_p13 }
 0x1b9   : > { %p678_p2 = pnand %p677_p1, %p671_p12 }
 0x1bb   : > { %681 = shalt.err (!%p678_p2)
}
 0x1bc   : > { %s682_s15 = scalar_lea.hbm %s900_s26, 64  ;;  %s684_s5 = scalar_lea.hbm %s939_s3, 128 }
 0x1bd   : > { %p683_p3 = scmp.ne.s32.totalorder %s900_s26, %s682_s15  ;;  %p685_p4 = scmp.lt.u32.totalorder %s900_s26, %s939_s3 }
 0x1be   : > { %p686_p5 = scmp.lt.u32.totalorder %s684_s5, %s682_s15  ;;  %p688_p7 = scmp.lt.u32.totalorder %s682_s15, %s900_s26 }
 0x1c0   : > { %p687_p6 = por %p686_p5, %p685_p4 }
 0x1c2   : > { %p689_p9 = por %p688_p7, %p687_p6 }
 0x1c4   : > { %p690_p10 = pnand %p689_p9, %p683_p3 }
 0x1c6   : > { %693 = shalt.err (!%p690_p10)
}
 0x1c7   : > { %s747_s8 = smov 64   ;;  %s748_s9 = smov 4  }
 0x1c8   : > { %471 = dma.vmem_to_hbm [thread:$0]  %s466_s19, 64, %s900_s26, %s890_s11, %s747_s8, %s747_s8, %s748_s9  }
 0x1c9 PF: > { %p618_p11 = scmp.ge.s32.totalorder %s744_s17, 2  ;;  %s480_s10 = sand.u32 1, %s724_s12  }
 0x1ca   : > { %s481_s18 = scalar_lea.sflag [#allocation3], %s480_s10 }
 0x1cb   : > { %p615_p12 = pnand %p618_p11, %p816_p8 }
 0x1cd   : > { %719 = dma.done.wait (!%p615_p12), %s481_s18, 2048  }
 0x1ce   : > { %721 = vsyncadd (!%p615_p12), %s481_s18, 4294965248  ;;  %s16_s17 = sadd.s32 1, %s744_s17   ;;  %s942_s12 = smov %s728_s13 }
 0x1cf   : > { %p13_p13 = scmp.ge.s32.totalorder %s16_s17, 4   ;;  %s943_s13 = smov %s732_s14 }
 0x1d0   : > { %s944_s14 = smov %s822_s25  ;;  %s945_s15 = smov %s740_s16 }
 0x1d1   : > { %s946_s16 = smov %s948_s20  ;;  %15 = sbr.rel (!%p13_p13) target bundleno = 4 (0x4), region = 67 }
 0x1d8   :  { %486 = vsyncpa [#allocation3], 1 }
 0x1d9   :  { %488 = vsyncpa [#allocation3 + $0x1], 1 }

</bundles_post_ra>
